<compile_context>
chip_gen: v6e
topology: v6e:2x2x1
jax: 0.10.0
libtpu: 0.0.40
codegen_flags: <defaults>
</compile_context>

<pallas_src>
import jax
import jax.numpy as jnp
import numpy as np
from jax.experimental import pallas as pl
from jax.experimental.pallas import tpu as pltpu

N2ID = {"A": 0, "C": 1, "G": 2, "T": 3, "N": 4}

_LANE = 128
_TARGET_OUT_BLOCK_BYTES = 8 * 1024 * 1024    # ~8 MiB output block per pipeline buffer
_VMEM_BUDGET_BYTES = 20 * 1024 * 1024        # double-buffered in+out budget
_VMEM_LIMIT_BYTES = 32 * 1024 * 1024         # safe on v5e/v6e (128 MiB) and v7x (64 MiB)


def _round_up(x: int, m: int) -> int:
    return (x + m - 1) // m * m


def _seq2tensor_kernel(ids_ref, out_ref):
    # ids_ref: (Bt, TL) int8 in VMEM ; out_ref: (Bt*4, TL) out_dtype in VMEM
    Bt, TL = ids_ref.shape
    # class-id iota hoisted out of the row loop (JAX does not CSE broadcasts)
    cls = jax.lax.broadcasted_iota(jnp.int32, (4, TL), 0)      # row index = class id
    for b in range(Bt):                                         # static unroll, Bt <= 8
        ids_b = ids_ref[b : b + 1, :].astype(jnp.int32)         # widen one row only
        onehot = (ids_b == cls).astype(jnp.float32)             # one-hot over A/C/G/T
        vals = jnp.where(ids_b == 4, 0.25, onehot)              # N rows -> all 0.25
        out_ref[b * 4 : (b + 1) * 4, :] = vals.astype(out_ref.dtype)  # convert on store


def seq2tensor_batch(ids: jax.Array, out_dtype=jnp.float32) -> jax.Array:
    """ids: (B, L) integer array with values in [0, 4]. Returns (B, 4, L)."""
    ids = jnp.asarray(ids)
    B, L = ids.shape
    itemsize = jnp.dtype(out_dtype).itemsize

    # Batch tile: full batch if small, else 8 rows (Bt*4 = 32 sublanes is dense
    # for both f32 (8-row) and bf16 (16-row) output packing).
    Bt = B if B <= 8 else 8
    n_b = pl.cdiv(B, Bt)

    # Lane tile: ~_TARGET_OUT_BLOCK_BYTES of output per block, capped so the
    # double-buffered (output + sublane-padded int8 input) footprint stays
    # within _VMEM_BUDGET_BYTES.
    out_row_bytes = Bt * 4 * itemsize                 # output bytes per lane of a block
    in_row_bytes = _round_up(Bt, 32)                  # int8 block pads sublanes to 32
    if L < _LANE:
        tl = L                                        # full-extent tiny block (legal)
    else:
        tl = _TARGET_OUT_BLOCK_BYTES // out_row_bytes
        tl = min(tl, _VMEM_BUDGET_BYTES // (2 * (out_row_bytes + in_row_bytes)))
        tl = max(_LANE, (tl // _LANE) * _LANE)
        tl = min(tl, (L // _LANE) * _LANE)            # keep tl a 128-multiple and <= L
        # keep >= ~4 grid steps when possible so v7x's two TensorCores both get work
        while n_b * pl.cdiv(L, tl) < 4 and tl > _LANE:
            tl = max(_LANE, _round_up(tl // 2, _LANE))

    ids8 = ids.astype(jnp.int8)                       # 1 B/base HBM input traffic

    out_flat = pl.pallas_call(
        _seq2tensor_kernel,
        out_shape=jax.ShapeDtypeStruct((B * 4, L), out_dtype),
        grid=(n_b, pl.cdiv(L, tl)),
        in_specs=[pl.BlockSpec((Bt, tl), lambda bi, li: (bi, li))],
        out_specs=pl.BlockSpec((Bt * 4, tl), lambda bi, li: (bi, li)),
        compiler_params=pltpu.CompilerParams(
            dimension_semantics=("parallel", "parallel"),
            vmem_limit_bytes=_VMEM_LIMIT_BYTES),
        cost_estimate=pl.CostEstimate(
            flops=0, transcendentals=0,
            bytes_accessed=B * L + B * 4 * L * itemsize),
    )(ids8)

    # (B*4, L) -> (B, 4, L): splits the leading dim only, no data movement.
    return out_flat.reshape(B, 4, L)


def seq2tensor(ids: jax.Array, out_dtype=jnp.float32) -> jax.Array:
    """ids: (L,) int with values in [0, 4]. Returns (4, L) — matches PyTorch module.

    Note: B=1 only fills 4 of 8 f32 sublanes per output tile; prefer
    seq2tensor_batch with B >= 2 (>= 4 for bf16) when the workload allows.
    """
    return seq2tensor_batch(ids[None, :], out_dtype=out_dtype)[0]


def seq2tensor_from_string(seq: str) -> jax.Array:
    # TODO(synk): the string->id lookup is host-side Python (no Pallas equivalent).
    ids = jnp.asarray([N2ID[c] for c in seq], dtype=jnp.int32)
    return seq2tensor(ids)


def _reference(ids: np.ndarray) -> np.ndarray:
    # Pure-numpy replica of the PyTorch forward.
    L = ids.shape[0]
    code = np.zeros((L, 5), dtype=np.float32)
    code[np.arange(L), ids] = 1.0
    code[code[:, 4] == 1] = 0.25
    code = code[:, :4]
    return code.T  # (4, L)


if __name__ == "__main__":
    key = jax.random.PRNGKey(0)
    B, L = 4, 200  # ragged L (not a multiple of 128) exercises the partial final block
    ids = jax.random.randint(key, (B, L), 0, 5, dtype=jnp.int32)
    ids_np = np.asarray(ids)
    ref = np.stack([_reference(ids_np[b]) for b in range(B)], axis=0)

    # float32 path (matches PyTorch module dtype exactly)
    out = jax.block_until_ready(seq2tensor_batch(ids))
    np.testing.assert_allclose(np.asarray(out), ref, rtol=0, atol=0)

    # bfloat16 path (halved writeback; 0/1/0.25 are exact in bf16, B*4=16 is sublane-dense)
    out_bf16 = jax.block_until_ready(seq2tensor_batch(ids, out_dtype=jnp.bfloat16))
    np.testing.assert_allclose(
        np.asarray(out_bf16.astype(jnp.float32)), ref, rtol=0, atol=0)

    # single-sequence path, identical to the PyTorch module's forward
    one = jax.block_until_ready(seq2tensor(ids[0]))
    np.testing.assert_allclose(np.asarray(one), _reference(ids_np[0]), rtol=0, atol=0)

    # string front-end with a tiny length (exercises the full-extent small tile)
    small = jax.block_until_ready(seq2tensor_from_string("ACGTN"))
    np.testing.assert_allclose(
        np.asarray(small),
        _reference(np.array([0, 1, 2, 3, 4], dtype=np.int32)),
        rtol=0, atol=0,
    )

    print("KERNEL_OK")
</pallas_src>

<mosaic_0001>
module attributes {stable_mosaic.version = 11 : i64} {
  func.func @_seq2tensor_kernel(%arg0: i32, %arg1: i32, %arg2: memref<4x128xi8, #tpu.memory_space<vmem>>, %arg3: memref<16x128xf32, #tpu.memory_space<vmem>>) attributes {dimension_semantics = [#tpu.dimension_semantics<parallel>, #tpu.dimension_semantics<parallel>], iteration_bounds = array<i64: 1, 2>, scalar_prefetch = 0 : i64, scratch_operands = 0 : i64, tpu.core_type = #tpu.core_type<tc>, window_params = [{transform_indices = @transform_0, window_bounds = array<i64: 4, 128>}, {transform_indices = @transform_1, window_bounds = array<i64: 16, 128>}]} {
    %0 = tpu.iota {dimensions = array<i32: 0>} : vector<4x128xi32>
    %c0 = arith.constant 0 : index
    %c0_0 = arith.constant 0 : index
    %1 = vector.load %arg2[%c0, %c0_0] : memref<4x128xi8, #tpu.memory_space<vmem>>, vector<1x128xi8>
    %2 = arith.extsi %1 : vector<1x128xi8> to vector<1x128xi32>
    %3 = vector.broadcast %2 : vector<1x128xi32> to vector<4x128xi32>
    %4 = arith.cmpi eq, %3, %0 : vector<4x128xi32>
    %5 = arith.extui %4 : vector<4x128xi1> to vector<4x128xi32>
    %6 = arith.sitofp %5 : vector<4x128xi32> to vector<4x128xf32>
    %c4_i32 = arith.constant 4 : i32
    %7 = vector.broadcast %c4_i32 : i32 to vector<1x128xi32>
    %8 = arith.cmpi eq, %2, %7 : vector<1x128xi32>
    %cst = arith.constant 2.500000e-01 : f32
    %9 = vector.shape_cast %8 : vector<1x128xi1> to vector<1x128xi1>
    %10 = vector.broadcast %9 : vector<1x128xi1> to vector<4x128xi1>
    %11 = vector.broadcast %cst : f32 to vector<4x128xf32>
    %12 = arith.select %10, %11, %6 : vector<4x128xi1>, vector<4x128xf32>
    %c0_1 = arith.constant 0 : index
    %c0_2 = arith.constant 0 : index
    %13 = vector.load %arg3[%c0_1, %c0_2] : memref<16x128xf32, #tpu.memory_space<vmem>>, vector<4x128xf32>
    tpu.vector_store %arg3[%c0_1, %c0_2], %12 {strides = array<i32>} : memref<16x128xf32, #tpu.memory_space<vmem>>, vector<4x128xf32>,
    %c1 = arith.constant 1 : index
    %c0_3 = arith.constant 0 : index
    %14 = vector.load %arg2[%c1, %c0_3] : memref<4x128xi8, #tpu.memory_space<vmem>>, vector<1x128xi8>
    %15 = arith.extsi %14 : vector<1x128xi8> to vector<1x128xi32>
    %16 = vector.broadcast %15 : vector<1x128xi32> to vector<4x128xi32>
    %17 = arith.cmpi eq, %16, %0 : vector<4x128xi32>
    %18 = arith.extui %17 : vector<4x128xi1> to vector<4x128xi32>
    %19 = arith.sitofp %18 : vector<4x128xi32> to vector<4x128xf32>
    %c4_i32_4 = arith.constant 4 : i32
    %20 = vector.broadcast %c4_i32_4 : i32 to vector<1x128xi32>
    %21 = arith.cmpi eq, %15, %20 : vector<1x128xi32>
    %cst_5 = arith.constant 2.500000e-01 : f32
    %22 = vector.shape_cast %21 : vector<1x128xi1> to vector<1x128xi1>
    %23 = vector.broadcast %22 : vector<1x128xi1> to vector<4x128xi1>
    %24 = vector.broadcast %cst_5 : f32 to vector<4x128xf32>
    %25 = arith.select %23, %24, %19 : vector<4x128xi1>, vector<4x128xf32>
    %c4 = arith.constant 4 : index
    %c0_6 = arith.constant 0 : index
    %26 = vector.load %arg3[%c4, %c0_6] : memref<16x128xf32, #tpu.memory_space<vmem>>, vector<4x128xf32>
    tpu.vector_store %arg3[%c4, %c0_6], %25 {strides = array<i32>} : memref<16x128xf32, #tpu.memory_space<vmem>>, vector<4x128xf32>,
    %c2 = arith.constant 2 : index
    %c0_7 = arith.constant 0 : index
    %27 = vector.load %arg2[%c2, %c0_7] : memref<4x128xi8, #tpu.memory_space<vmem>>, vector<1x128xi8>
    %28 = arith.extsi %27 : vector<1x128xi8> to vector<1x128xi32>
    %29 = vector.broadcast %28 : vector<1x128xi32> to vector<4x128xi32>
    %30 = arith.cmpi eq, %29, %0 : vector<4x128xi32>
    %31 = arith.extui %30 : vector<4x128xi1> to vector<4x128xi32>
    %32 = arith.sitofp %31 : vector<4x128xi32> to vector<4x128xf32>
    %c4_i32_8 = arith.constant 4 : i32
    %33 = vector.broadcast %c4_i32_8 : i32 to vector<1x128xi32>
    %34 = arith.cmpi eq, %28, %33 : vector<1x128xi32>
    %cst_9 = arith.constant 2.500000e-01 : f32
    %35 = vector.shape_cast %34 : vector<1x128xi1> to vector<1x128xi1>
    %36 = vector.broadcast %35 : vector<1x128xi1> to vector<4x128xi1>
    %37 = vector.broadcast %cst_9 : f32 to vector<4x128xf32>
    %38 = arith.select %36, %37, %32 : vector<4x128xi1>, vector<4x128xf32>
    %c8 = arith.constant 8 : index
    %c0_10 = arith.constant 0 : index
    %39 = vector.load %arg3[%c8, %c0_10] : memref<16x128xf32, #tpu.memory_space<vmem>>, vector<4x128xf32>
    tpu.vector_store %arg3[%c8, %c0_10], %38 {strides = array<i32>} : memref<16x128xf32, #tpu.memory_space<vmem>>, vector<4x128xf32>,
    %c3 = arith.constant 3 : index
    %c0_11 = arith.constant 0 : index
    %40 = vector.load %arg2[%c3, %c0_11] : memref<4x128xi8, #tpu.memory_space<vmem>>, vector<1x128xi8>
    %41 = arith.extsi %40 : vector<1x128xi8> to vector<1x128xi32>
    %42 = vector.broadcast %41 : vector<1x128xi32> to vector<4x128xi32>
    %43 = arith.cmpi eq, %42, %0 : vector<4x128xi32>
    %44 = arith.extui %43 : vector<4x128xi1> to vector<4x128xi32>
    %45 = arith.sitofp %44 : vector<4x128xi32> to vector<4x128xf32>
    %c4_i32_12 = arith.constant 4 : i32
    %46 = vector.broadcast %c4_i32_12 : i32 to vector<1x128xi32>
    %47 = arith.cmpi eq, %41, %46 : vector<1x128xi32>
    %cst_13 = arith.constant 2.500000e-01 : f32
    %48 = vector.shape_cast %47 : vector<1x128xi1> to vector<1x128xi1>
    %49 = vector.broadcast %48 : vector<1x128xi1> to vector<4x128xi1>
    %50 = vector.broadcast %cst_13 : f32 to vector<4x128xf32>
    %51 = arith.select %49, %50, %45 : vector<4x128xi1>, vector<4x128xf32>
    %c12 = arith.constant 12 : index
    %c0_14 = arith.constant 0 : index
    %52 = vector.load %arg3[%c12, %c0_14] : memref<16x128xf32, #tpu.memory_space<vmem>>, vector<4x128xf32>
    tpu.vector_store %arg3[%c12, %c0_14], %51 {strides = array<i32>} : memref<16x128xf32, #tpu.memory_space<vmem>>, vector<4x128xf32>,
    return
  }
  func.func @transform_0(%arg0: i32, %arg1: i32) -> (i32, i32) {
    %c0_i32 = arith.constant 0 : i32
    return %arg0, %arg1 : i32, i32
  }
  func.func @transform_1(%arg0: i32, %arg1: i32) -> (i32, i32) {
    %c0_i32 = arith.constant 0 : i32
    return %arg0, %arg1 : i32, i32
  }
}

</mosaic_0001>

<bundles_post_ra>
// kernel: tpu_custom_call.1
= control target key start
LH: loop header
LB: loop body
LE: loop exit
PB: predicated region body
PF: predicated region fallthrough
CT: control target
= control target key end

     0   :  { %6 = vsyncpa [#allocation3], 0  ;;  %s678_s0 = inlined_call_operand.hbm [shape: s8[4,200], index: 0, kind: input, shape index: {}]   ;;  %s679_s1 = inlined_call_operand.hbm [shape: f32[16,200], index: 1, kind: output, shape index: {}]  }
   0x1   :  { %8 = vsyncpa [#allocation3 + $0x1], 0 }
   0x2   :  { %9 = vsyncpa [#allocation4], 0 }
   0x3   :  { %11 = vsyncpa [#allocation4 + $0x1], 0  ;;  %s529_s6 = smov 0   ;;  %s531_s7 = smov 0  }
   0x4   :  { %s533_s8 = smov 0   ;;  %s535_s9 = smov 0  }
   0x5   :  { %s537_s10 = smov 0   ;;  %s539_s11 = smov 0  }
   0x6 LB: > { %s320_s12 = sadd.s32 4294967295, %s510_s11   ;;  %s321_s13 = sadd.s32 4294967294, %s510_s11   ;;  %s510_s11 = sphi %s539_s11, %s17_s11   ;;  %s506_s10 = sphi %s537_s10, %s691_s10   ;;  %s502_s9 = sphi %s535_s9, %s690_s9   ;;  %s498_s8 = sphi %s533_s8, %s689_s8   ;;  %s494_s7 = sphi %s531_s7, %s688_s7   ;;  %s490_s6 = sphi %s529_s6, %s687_s6  }
   0x7   : > { %s26_s14 = sadd.s32 1, %s506_s10  ;;  %s38_s15 = sadd.s32 1, %s498_s8 }
   0x8   : > { %p27_p0 = scmp.ge.s32.totalorder %s26_s14, 2  ;;  %p45_p1 = scmp.ne.s32.totalorder %s498_s8, %s494_s7 }
   0x9   : > { %p46_p2 = scmp.eq.s32.totalorder %s510_s11, 0  ;;  %p51_p3 = scmp.ne.s32.totalorder %s494_s7, %s490_s6 }
   0xa   : > { %s693_s14 = smov (%p27_p0, %s26_s14), 0  ;;  %p52_p5 = scmp.eq.s32.totalorder %s320_s12, 0 }
   0xb   : > { %p570_p4 = por %p46_p2, %p45_p1  ;;  %s34_s17 = ssub.s32 %s506_s10, %s693_s14 }
   0xc   : > { %p77_p6 = scmp.eq.s32.totalorder %s320_s12, 1  ;;  %p36_p7 = scmp.eq.s32.totalorder %s34_s17, 0 }
   0xd   : > { %p576_p8 = por %p52_p5, %p51_p3  ;;  %p83_p10 = scmp.eq.s32.totalorder %s321_s13, 1 }
   0xe   : > { %p580_p9 = por %p77_p6, %p45_p1  ;;  %p347_p13 = scmp.lt.s32.totalorder %s510_s11, 2 }
   0xf   : > { %s585_s20 = scalar_select %p36_p7, %s498_s8, %s38_s15  }
  0x10   : > { %p587_p11 = por %p83_p10, %p51_p3  ;;  %s103_s22 = sand.u32 1, %s498_s8  }
  0x11   : > { %s324_s23 = sshll.u32 %s506_s10, 4  ;;  %s106_s24 = scalar_lea.vmem [#allocation2], %s103_s22 }
  0x12   : > { %s683_s21 = scalar_select %p587_p11, 1, 0 }
  0x13   : > { %s115_s25 = sshll.u32 %s106_s24, 4  ;;  %s113_s28 = scalar_lea.hbm %s678_s0, %s324_s23  ;;  %s116_s25 = int_to_ptr.vmem [resolvable:$true] %s115_s25 }
  0x14   : > { %p600_p0 = pnand %p347_p13, %p570_p4  ;;  %p325_p1 = scmp.ge.s32.totalorder %s510_s11, 1 }
  0x15   : > { %p120_p2 = scmp.lt.s32.totalorder %s510_s11, 3  ;;  %s104_s30 = scalar_lea.sflag [#allocation3], %s103_s22 }
  0x16   : > { %p404_p3 = pneg %p600_p0  ;;  %s415_s2 = scalar_lea.vmem %s116_s25, 16 }
  0x17   : > { %p416_p5 = scmp.ne.s32.totalorder %s116_s25, %s415_s2  ;;  %s512_s3 = smov [#allocation2]  }
  0x18   : > { %s420_s4 = sshll.u32 %s512_s3, 4  ;;  %s421_s4 = int_to_ptr.vmem [resolvable:$false] %s420_s4 }
  0x19   : > { %p418_p6 = pnand %p416_p5, %p404_p3  ;;  %s422_s5 = scalar_lea.vmem %s421_s4, 32 }
  0x1a   : > { %p423_p10 = scmp.lt.s32.totalorder %s116_s25, %s421_s4  ;;  %p424_p12 = scmp.lt.s32.totalorder %s422_s5, %s415_s2 }
  0x1b   : > { %p419_p7 = pneg %p418_p6 }
  0x1c   : > { %p425_p4 = por %p424_p12, %p423_p10 }
  0x1e   : > { %p426_p13 = pnand %p425_p4, %p419_p7 }
  0x20   : > { %429 = shalt.err (!%p426_p13)
}
  0x21   : > { %342 = dma.hbm_to_vmem [thread:$0]  (!%p600_p0), %s113_s28, 16, %s116_s25, %s104_s30  }
  0x22   : > { %p121_p11 = pnand %p325_p1, %p120_p2 }
  0x23   : > { %s615_s12 = sand.u32 (!%p121_p11), 1, %s494_s7  }
  0x24   : > { %124 = sbr.rel (%p121_p11) target bundleno = 73 (0x49), region = 24  ;;  %s127_s13 = scalar_lea.sflag (!%p121_p11), [#allocation3], %s615_s12 }
  0x25   : > { %s129_s15 = scalar_lea.vmem (!%p121_p11), [#allocation2], %s615_s12 }
  0x29   : > { %481 = dma.done.wait (%p576_p8), %s127_s13, 16  }
  0x2a   : > { %483 = vsyncadd (%p576_p8), %s127_s13, 4294967280  ;;  %v148_v0 = vlaneseq  ;;  %v150_v5 = vld [vmem:[%s129_s15] sm:$0x1]  ;;  %s326_s16 = sshll.u32 %s615_s12, 4  ;;  %v513_v16 = vmov 0   ;;  %v514_v22 = vmov 0.0  }
  0x2b   : > { %v168_v6 = vld [vmem:[%s129_s15] sm:$0x1]  ;;  %v151_v8 = vunpack.c.0.s8 %v150_v5  ;;  %s332_s17 = sshll.u32 %s502_s9, 7  ;;  %s146_s18 = scalar_lea.vmem [#allocation5], %s326_s16 }
  0x2c   : > { %v149_v1 = vshrl.u32 %v148_v0, 7  ;;  %v186_v7 = vld [vmem:[%s129_s15] sm:$0x1]  ;;  %v169_v9 = vunpack.c.0.s8 %v168_v6  ;;  %s238_s22 = sshll.u32 %s146_s18, 4  ;;  %s628_s25 = scalar_lea.hbm %s679_s1, %s332_s17  ;;  %s630_s22 = int_to_ptr.vmem [resolvable:$true] %s238_s22 }
  0x2d   : > { %v187_v10 = vunpack.c.0.s8 %v186_v7  ;;  %v204_v11 = vld [vmem:[%s129_s15] sm:$0x1]  ;;  %vm159_vm0 = vcmp.eq.s32.totalorder %v151_v8, 4  ;;  %s223_s9 = scalar_lea.sflag [#allocation4], %s615_s12  ;;  %s430_s26 = scalar_lea.vmem %s630_s22, 256 }
  0x2e   : > { %v154_v2 = vsub.s32 0, %v149_v1  ;;  %v172_v3 = vsub.s32 1, %v149_v1  ;;  %v190_v4 = vsub.s32 2, %v149_v1  ;;  %v205_v12 = vunpack.c.0.s8 %v204_v11  ;;  %p431_p8 = scmp.ne.s32.totalorder %s630_s22, %s430_s26  ;;  %s515_s27 = smov [#allocation5]  }
  0x2f   : > { %v208_v13 = vsub.s32 3, %v149_v1  ;;  %vm177_vm1 = vcmp.eq.s32.totalorder %v169_v9, 4  ;;  %v160_v17 = vsel %vm159_vm0, 1, %v513_v16  ;;  %vm195_vm2 = vcmp.eq.s32.totalorder %v187_v10, 4  ;;  %s434_s28 = sshll.u32 %s515_s27, 4  ;;  %s435_s28 = int_to_ptr.vmem [resolvable:$false] %s434_s28 }
  0x30   : > { %v155_v14 = vrot.slane %v151_v8, %v154_v2  ;;  %v173_v15 = vrot.slane %v169_v9, %v172_v3  ;;  %v178_v18 = vsel %vm177_vm1, 1, %v513_v16  ;;  %v191_v19 = vrot.slane %v187_v10, %v190_v4  ;;  %p432_p11 = pnand %p431_p8, %p580_p9  ;;  %s436_s29 = scalar_lea.vmem %s435_s28, 512 }
  0x31   : > { %v164_v20 = vrot.slane %v160_v17, %v154_v2  ;;  %v182_v21 = vrot.slane %v178_v18, %v172_v3  ;;  %v196_v25 = vsel %vm195_vm2, 1, %v513_v16  ;;  %v209_v30 = vrot.slane %v205_v12, %v208_v13  ;;  %p437_p0 = scmp.lt.s32.totalorder %s630_s22, %s435_s28  ;;  %p438_p1 = scmp.lt.s32.totalorder %s436_s29, %s430_s26 }
  0x32   : > { %vm156_vm3 = vcmp.eq.s32.totalorder %v155_v14, %v149_v1  ;;  %vm174_vm4 = vcmp.eq.s32.totalorder %v173_v15, %v149_v1  ;;  %vm192_vm5 = vcmp.eq.s32.totalorder %v191_v19, %v149_v1  ;;  %v200_v27 = vrot.slane %v196_v25, %v190_v4  ;;  %p433_p12 = pneg %p432_p11 }
  0x33   : > { %v327_v23 = vsel %vm156_vm3, 1.0, %v514_v22  ;;  %v328_v24 = vsel %vm174_vm4, 1.0, %v514_v22  ;;  %vm165_vm6 = vcmp.eq.s32.totalorder %v164_v20, 1  ;;  %vm183_vm7 = vcmp.eq.s32.totalorder %v182_v21, 1  ;;  %p439_p2 = por %p438_p1, %p437_p0 }
  0x34   : > { %v329_v26 = vsel %vm192_vm5, 1.0, %v514_v22  ;;  %v166_v28 = vsel %vm165_vm6, 0.25, %v327_v23  ;;  %v184_v29 = vsel %vm183_vm7, 0.25, %v328_v24  ;;  %vm213_vm8 = vcmp.eq.s32.totalorder %v205_v12, 4 }
  0x35   : > { %167 = vst [vmem:[%s146_s18] sm:$0xf] %v166_v28  ;;  %185 = vst [vmem:[%s146_s18 + $0x4] sm:$0xf] %v184_v29  ;;  %vm201_vm9 = vcmp.eq.s32.totalorder %v200_v27, 1  ;;  %v214_v31 = vsel %vm213_vm8, 1, %v513_v16  ;;  %vm210_vm10 = vcmp.eq.s32.totalorder %v209_v30, %v149_v1  ;;  %p440_p3 = pnand %p439_p2, %p433_p12 }
  0x36   : > { %v202_v32 = vsel %vm201_vm9, 0.25, %v329_v26  ;;  %v218_v33 = vrot.slane %v214_v31, %v208_v13  ;;  %v330_v34 = vsel %vm210_vm10, 1.0, %v514_v22 }
  0x37   : > { %203 = vst [vmem:[%s146_s18 + $0x8] sm:$0xf] %v202_v32 }
  0x38   : > { %vm219_vm11 = vcmp.eq.s32.totalorder %v218_v33, 1 }
  0x39   : > { %v220_v35 = vsel %vm219_vm11, 0.25, %v330_v34 }
  0x3a   : > { %221 = vst [vmem:[%s146_s18 + $0xc] sm:$0xf] %v220_v35 }
  0x3b   : > { %443 = shalt.err (!%p440_p3)
}
  0x3c   : > { %s444_s30 = scalar_lea.hbm %s628_s25, 256  ;;  %s448_s4 = scalar_lea.hbm %s679_s1, 512 }
  0x3d   : > { %p445_p5 = scmp.ne.s32.totalorder %s628_s25, %s444_s30  ;;  %p449_p10 = scmp.lt.s32.totalorder %s628_s25, %s679_s1 }
  0x3e   : > { %p450_p4 = scmp.lt.s32.totalorder %s448_s4, %s444_s30 }
  0x3f   : > { %p446_p6 = pnand %p445_p5, %p580_p9 }
  0x40   : > { %p451_p13 = por %p450_p4, %p449_p10 }
  0x41   : > { %p447_p7 = pneg %p446_p6 }
  0x43   : > { %p452_p8 = pnand %p451_p13, %p447_p7 }
  0x45   : > { %455 = shalt.err (!%p452_p8)
}
  0x46   : > { %s516_s15 = smov 128   ;;  %s517_s16 = smov 256  }
  0x47   : > { %s518_s17 = smov 8  }
  0x48   : > { %337 = dma.vmem_to_hbm [thread:$0]  (%p580_p9), %s630_s22, 256, %s628_s25, %s223_s9, %s516_s15, %s517_s16, %s518_s17  }
  0x49 PF: > { %s253_s18 = sand.u32 1, %s490_s6   ;;  %p685_p11 = scmp.ne.s32.totalorder %s683_s21, 0 }
  0x4a   : > { %p686_p12 = scmp.ge.s32.totalorder %s510_s11, 2  ;;  %s254_s23 = scalar_lea.sflag [#allocation4], %s253_s18 }
  0x4c   : > { %p344_p0 = pnand %p686_p12, %p685_p11 }
  0x4e   : > { %p345_p1 = pneg %p344_p0 }
  0x50   : > { %485 = dma.done.wait (%p345_p1), %s254_s23, 256  }
  0x51   : > { %487 = vsyncadd (%p345_p1), %s254_s23, 4294967040  ;;  %s17_s11 = sadd.s32 1, %s510_s11   ;;  %s687_s6 = smov %s494_s7 }
  0x52   : > { %p14_p2 = scmp.ge.s32.totalorder %s17_s11, 4   ;;  %s688_s7 = smov %s498_s8 }
  0x53   : > { %s689_s8 = smov %s585_s20  ;;  %s690_s9 = smov %s506_s10 }
  0x54   : > { %s691_s10 = smov %s693_s14  ;;  %16 = sbr.rel (!%p14_p2) target bundleno = 6 (0x6), region = 69 }
  0x59   :  { %259 = vsyncpa [#allocation3], 1 }
  0x5a   :  { %261 = vsyncpa [#allocation3 + $0x1], 1 }
  0x5b   :  { %262 = vsyncpa [#allocation4], 1 }
  0x5c   :  { %264 = vsyncpa [#allocation4 + $0x1], 1 }

</bundles_post_ra>
